<compile_context>
chip_gen: v7x
topology: tpu7x:2x2x1
jax: 0.10.0
libtpu: 0.0.40
codegen_flags: <defaults>
</compile_context>

<pallas_src>
import jax
import jax.numpy as jnp
from jax import lax
from jax.experimental import pallas as pl
from jax.experimental.pallas import tpu as pltpu


def _linear_kernel(x_ref, p_ref, o_ref):
    # x_ref: [B, F]        (VMEM)
    # p_ref: [OUT+1, F]    (VMEM; rows 0..OUT-1 = weight, row OUT = bias in first OUT lanes)
    # o_ref: [B, OUT]      (VMEM)
    n_out = o_ref.shape[-1]                              # static (2)
    x = x_ref[...]                                       # [B, F]
    w = p_ref[:n_out, :]                                 # [OUT, F] — contraction axis on lanes
    bias = p_ref[n_out:n_out + 1, :][:, :n_out]          # [1, OUT] — broadcasts over sublanes

    # Single fused contraction: (B,F) x (OUT,F) -> (B,OUT), f32 accumulation.
    acc = lax.dot_general(
        x, w,
        dimension_numbers=(((1,), (1,)), ((), ())),
        preferred_element_type=jnp.float32,
    )                                                    # [B, OUT]

    # One vectorized bias add + one full-tile store.
    o_ref[...] = (acc + bias).astype(o_ref.dtype)


def pack_params(weight, bias):
    """One-time (init) packing of weight [OUT, F] and bias [OUT] into [OUT+1, F]."""
    out_features, num_inputs = weight.shape
    bias_row = jnp.zeros((1, num_inputs), weight.dtype).at[0, :out_features].set(bias)
    return jnp.concatenate([weight, bias_row], axis=0)   # [OUT+1, F]


def attention_forward(x, packed):
    """x: [B, F] float32, packed: [OUT+1, F] from pack_params()."""
    B, F = x.shape
    OUT = packed.shape[0] - 1
    cost = pl.CostEstimate(
        flops=2 * B * F * OUT,
        transcendentals=0,
        bytes_accessed=4 * (B * F + (OUT + 1) * F + B * OUT),
    )
    return pl.pallas_call(
        _linear_kernel,
        out_shape=jax.ShapeDtypeStruct((B, OUT), x.dtype),
        in_specs=[
            pl.BlockSpec(memory_space=pltpu.MemorySpace.VMEM),   # x       (whole array)
            pl.BlockSpec(memory_space=pltpu.MemorySpace.VMEM),   # packed  (weight+bias, 1 DMA)
        ],
        out_specs=pl.BlockSpec(memory_space=pltpu.MemorySpace.VMEM),
        cost_estimate=cost,
    )(x, packed)


if __name__ == "__main__":
    key = jax.random.PRNGKey(0)
    k_x, k_w, k_b = jax.random.split(key, 3)

    batch = 8
    num_inputs = 32
    out_features = 2

    # Deterministic parameter init mirroring the PyTorch module:
    #  - weight: kaiming_normal_ (fan_in mode, gain=sqrt(2)) -> std = sqrt(2/fan_in)
    #  - bias:   PyTorch Linear default U(-1/sqrt(fan_in), 1/sqrt(fan_in))
    w_std = jnp.sqrt(2.0 / num_inputs)
    weight = w_std * jax.random.normal(k_w, (out_features, num_inputs), jnp.float32)
    b_bound = 1.0 / jnp.sqrt(num_inputs)
    bias = jax.random.uniform(k_b, (out_features,), jnp.float32,
                              minval=-b_bound, maxval=b_bound)

    x = jax.random.normal(k_x, (batch, num_inputs), jnp.float32)

    # One-time parameter packing (init-time, not per-call).
    packed = pack_params(weight, bias)

    out = attention_forward(x, packed)
    out = jax.block_until_ready(out)

    # Sanity check against plain-JAX reference of the linear layer.
    ref = x @ weight.T + bias
    assert out.shape == (batch, out_features)
    assert jnp.allclose(out, ref, atol=1e-5, rtol=1e-5)

    print("KERNEL_OK")
</pallas_src>

<mosaic_0001>
module attributes {stable_mosaic.version = 11 : i64} {
  func.func @_linear_kernel(%arg0: memref<8x32xf32, #tpu.memory_space<vmem>>, %arg1: memref<3x32xf32, #tpu.memory_space<vmem>>, %arg2: memref<8x2xf32, #tpu.memory_space<vmem>>) attributes {dimension_semantics = [], scalar_prefetch = 0 : i64, scratch_operands = 0 : i64, tpu.core_type = #tpu.core_type<tc>} {
    %c0 = arith.constant 0 : index
    %c0_0 = arith.constant 0 : index
    %0 = vector.load %arg0[%c0, %c0_0] : memref<8x32xf32, #tpu.memory_space<vmem>>, vector<8x32xf32>
    %c0_1 = arith.constant 0 : index
    %c0_2 = arith.constant 0 : index
    %1 = vector.load %arg1[%c0_1, %c0_2] : memref<3x32xf32, #tpu.memory_space<vmem>>, vector<2x32xf32>
    %c2 = arith.constant 2 : index
    %c0_3 = arith.constant 0 : index
    %2 = vector.load %arg1[%c2, %c0_3] : memref<3x32xf32, #tpu.memory_space<vmem>>, vector<1x32xf32>
    %3 = vector.extract_strided_slice %2 {offsets = [0, 0], sizes = [1, 2], strides = [1, 1]} : vector<1x32xf32> to vector<1x2xf32>
    %cst = arith.constant dense<0.000000e+00> : vector<8x2xf32>
    %4 = tpu.matmul %0, %1, %cst {dimension_numbers = #tpu.dot_dimension_numbers<[1], [1], [0], [0], [0, 0, 1, 0], [], []>} : vector<8x32xf32>, vector<2x32xf32>, vector<8x2xf32> -> vector<8x2xf32>
    %5 = vector.broadcast %3 : vector<1x2xf32> to vector<8x2xf32>
    %6 = arith.addf %4, %5 : vector<8x2xf32>
    %c0_4 = arith.constant 0 : index
    %c0_5 = arith.constant 0 : index
    %7 = vector.load %arg2[%c0_4, %c0_5] : memref<8x2xf32, #tpu.memory_space<vmem>>, vector<8x2xf32>
    tpu.vector_store %arg2[%c0_4, %c0_5], %6 {strides = array<i32>} : memref<8x2xf32, #tpu.memory_space<vmem>>, vector<8x2xf32>,
    return
  }
}

</mosaic_0001>

<bundles_post_ra>
// kernel: tpu_custom_call.1
= control target key start
LH: loop header
LB: loop body
LE: loop exit
PB: predicated region body
PF: predicated region fallthrough
CT: control target
= control target key end

     0   :  { %7 = vsyncpa [#allocation3], 0  ;;  %s235_s0 = inlined_call_operand.hbm [shape: f32[8,32], index: 0, kind: input, shape index: {}]   ;;  %s236_s1 = inlined_call_operand.hbm [shape: f32[3,32], index: 1, kind: input, shape index: {}]   ;;  %s237_s2 = inlined_call_operand.vmem [shape: f32[8,2], index: 2, kind: output, shape index: {}]  }
   0x1   :  { %8 = vsyncpa [#allocation5], 0  ;;  %s189_s9 = smov [#allocation2]   ;;  %s190_s11 = smov [#allocation4]  }
   0x2   :  { %s15_s10 = sshll.u32 %s189_s9, 4  ;;  %s25_s12 = sshll.u32 %s190_s11, 4  ;;  %s16_s10 = int_to_ptr.vmem [resolvable:$true] %s15_s10  ;;  %s26_s12 = int_to_ptr.vmem [resolvable:$true] %s25_s12 }
   0x3   :  { %s141_s15 = scalar_lea.hbm %s235_s0, 128 }
   0x4   :  { %p142_p0 = scmp.ne.s32.totalorder %s235_s0, %s141_s15  ;;  %p145_p1 = scmp.lt.u32.totalorder %s141_s15, %s235_s0 }
   0x6   :  { %p147_p2 = pnand %p145_p1, %p142_p0 }
   0x8   :  { %150 = shalt.err (!%p147_p2)
}
   0x9   :  { %s151_s20 = scalar_lea.vmem %s16_s10, 128  ;;  %p156_p4 = scmp.lt.s32.totalorder %s16_s10, %s16_s10 }
   0xa   :  { %p152_p3 = scmp.ne.s32.totalorder %s16_s10, %s151_s20  ;;  %p157_p5 = scmp.lt.s32.totalorder %s151_s20, %s151_s20 }
   0xc   :  { %p158_p6 = por %p157_p5, %p156_p4 }
   0xe   :  { %p159_p7 = pnand %p158_p6, %p152_p3 }
  0x10   :  { %162 = shalt.err (!%p159_p7)
}
  0x11   :  { %18 = dma.hbm_to_vmem [thread:$0]  %s235_s0, 128, %s16_s10, [#allocation3]  }
  0x12   :  { %s163_s25 = scalar_lea.hbm %s236_s1, 64 }
  0x13   :  { %p164_p8 = scmp.ne.s32.totalorder %s236_s1, %s163_s25  ;;  %p167_p9 = scmp.lt.u32.totalorder %s163_s25, %s236_s1 }
  0x15   :  { %p169_p10 = pnand %p167_p9, %p164_p8 }
  0x17   :  { %172 = shalt.err (!%p169_p10)
}
  0x18   :  { %s173_s30 = scalar_lea.vmem %s26_s12, 64  ;;  %p178_p12 = scmp.lt.s32.totalorder %s26_s12, %s26_s12 }
  0x19   :  { %p174_p11 = scmp.ne.s32.totalorder %s26_s12, %s173_s30  ;;  %p179_p13 = scmp.lt.s32.totalorder %s173_s30, %s173_s30 }
  0x1b   :  { %p180_p0 = por %p179_p13, %p178_p12 }
  0x1d   :  { %p181_p1 = pnand %p180_p0, %p174_p11 }
  0x1f   :  { %184 = shalt.err (!%p181_p1)
}
  0x20   :  { %28 = dma.hbm_to_vmem [thread:$0]  %s236_s1, 64, %s26_s12, [#allocation5]  }
  0x21   :  { %185 = dma.done.wait [#allocation3], 128  }
  0x22   :  { %186 = vsyncadd [#allocation3], 4294967168 }
  0x23   :  { %187 = dma.done.wait [#allocation5], 64  }
  0x24   :  { %188 = vsyncadd [#allocation5], 4294967232  ;;  %v191_v0 = vmov 0.0   ;;  %vm192_vm0 = vmmov 0   ;;  %vm42_vm1 = vcmask 261120   ;;  %v35_v2 = vld [vmem:[#allocation2] sm:$0xff] }
  0x25   :  { %132 = vmatprep.subr.mxu0 %v191_v0  ;;  %134 = vmatprep.mubr.msk.f32.mxu0 %vm192_vm0, %v191_v0  ;;  %v36_v1 = vld [vmem:[#allocation4] sm:$0x3]  ;;  %v127_v3 = vld [vmem:[#allocation4 + $0x2] ss:$0 sm:$0xff]  ;;  %vm119_vm2 = vcmask 15360  }
  0x26   :  { %133 = vmatpush3.xpose.msk.msra.mxu0 %vm42_vm1, %v36_v1 }
  0x29   :  { %135 = vmatmul.mubr.msk.f32.vlgmr.msra.gmra.mrb[0].mxu0 %vm42_vm1, %v35_v2 }
  0xfc   :  { %v115_v4 = vpop.f32.mrb[0].mxu0 }
  0xfd   :  { %v116_v5 = vadd.f32 %v127_v3, %v115_v4  ;;  %v136_v6 = vpop.f32.mrb[1].mxu0 }
  0xff   :  { %120 = vst.msk [vmem:[%s237_s2] sm:$0xff] %vm119_vm2, %v116_v5 }
 0x100   :  { %125 = vsyncpa [#allocation3], 1 }
 0x101   :  { %126 = vsyncpa [#allocation5], 1 }

</bundles_post_ra>
